<compile_context>
chip_gen: v7x
topology: tpu7x:2x2x1
jax: 0.10.0
libtpu: 0.0.40
codegen_flags: <defaults>
</compile_context>

<pallas_src>
import math

import jax
import jax.numpy as jnp
from jax.experimental import pallas as pl
from jax.experimental.pallas import tpu as pltpu

_LANE = 128


def _copy_kernel(x_ref, o_ref):
    # Identity copy of one lane-dense tile; Flatten has no arithmetic.
    o_ref[...] = x_ref[...]


def _round_up(x: int, m: int) -> int:
    return ((x + m - 1) // m) * m


def _round_down(x: int, m: int) -> int:
    return max(m, (x // m) * m)


def _chip_tuning():
    """Generation-aware (target_block_bytes, vmem_limit_bytes)."""
    vmem_cap = 128 * 1024 * 1024
    try:
        info_fn = getattr(pltpu, "get_tpu_info", None)
        if info_fn is not None:
            vmem_cap = int(getattr(info_fn(), "vmem_capacity_bytes", vmem_cap))
    except Exception:
        pass
    if vmem_cap <= 64 * 1024 * 1024:
        # v7x-class: fastest HBM, smallest VMEM -> big blocks, keep headroom.
        return 8 * 1024 * 1024, 48 * 1024 * 1024
    # v5e / v6e: 128 MiB physical VMEM; 4 MiB blocks are past the roofline knee.
    return 4 * 1024 * 1024, 40 * 1024 * 1024


def flatten_pallas(x: jax.Array, start_dim: int) -> jax.Array:
    """Equivalent of torch.Tensor.flatten(start_dim=start_dim)."""
    nd = x.ndim
    if start_dim < 0:  # normalize, matching torch.flatten
        start_dim += nd
    assert 0 <= start_dim < nd, "Flatten - start_dim should be < number of shapes"

    lead_shape = x.shape[:start_dim]                 # dims kept as-is
    tail = int(math.prod(x.shape[start_dim:]))       # dims collapsed
    out_shape = lead_shape + (tail,)

    if x.size == 0:
        return jnp.reshape(x, out_shape)

    rows = int(math.prod(lead_shape)) if lead_shape else 1
    cols = tail
    itemsize = jnp.dtype(x.dtype).itemsize
    sub_mult = max(8, 32 // itemsize)                # 8 f32 / 16 bf16 / 32 int8

    target_bytes, vmem_limit = _chip_tuning()

    # ---- lane (cols) blocking --------------------------------------------
    max_cols = max(_LANE, (target_bytes // (sub_mult * itemsize)) // _LANE * _LANE)
    if cols <= _LANE:
        block_cols = cols                            # full extent
    elif cols % _LANE == 0:
        block_cols = min(cols, max_cols)             # lane-dense blocks
    elif cols <= max_cols:
        block_cols = cols                            # full extent, unaligned tail
    else:
        block_cols = max_cols                        # partial last block masked
    grid_cols = pl.cdiv(cols, block_cols)

    # ---- sublane (rows) blocking -------------------------------------------
    cols_padded = _round_up(block_cols, _LANE)
    if rows <= sub_mult:
        block_rows = rows                            # full extent
    else:
        row_budget = max(sub_mult, target_bytes // (cols_padded * itemsize))
        block_rows = _round_down(row_budget, sub_mult)
        # Keep >= ~8 grid steps so v7x's 2 TCs both stream with double-buffering.
        want_row_steps = max(1, -(-8 // grid_cols))
        rows_for_steps = _round_up(pl.cdiv(rows, want_row_steps), sub_mult)
        block_rows = max(sub_mult, min(block_rows, rows_for_steps))
    grid_rows = pl.cdiv(rows, block_rows)

    block_bytes = _round_up(block_rows, sub_mult) * cols_padded * itemsize
    vmem_limit = int(max(vmem_limit, 6 * block_bytes))

    # Only glue: flatten-to-2D view of the input (XLA handles it once);
    # the output reshape merely splits the leading dim -> free metadata.
    x2d = jnp.reshape(x, (rows, cols))

    out2d = pl.pallas_call(
        _copy_kernel,
        out_shape=jax.ShapeDtypeStruct((rows, cols), x.dtype),
        grid=(grid_rows, grid_cols),
        in_specs=[pl.BlockSpec((block_rows, block_cols), lambda i, j: (i, j))],
        out_specs=pl.BlockSpec((block_rows, block_cols), lambda i, j: (i, j)),
        compiler_params=pltpu.CompilerParams(
            dimension_semantics=("parallel", "parallel"),
            vmem_limit_bytes=vmem_limit,
        ),
        cost_estimate=pl.CostEstimate(
            flops=0,
            transcendentals=0,
            bytes_accessed=2 * rows * cols * itemsize,
        ),
    )(x2d)

    return jnp.reshape(out2d, out_shape)


if __name__ == "__main__":
    key = jax.random.PRNGKey(0)
    k1, k2, k3 = jax.random.split(key, 3)

    flatten_jit = jax.jit(flatten_pallas, static_argnums=1)

    # NCHW conv-style input: batch=2, channels=4, spatial=16x16, start_dim=1.
    x = jax.random.normal(k1, (2, 4, 16, 16), dtype=jnp.float32)
    out = jax.block_until_ready(flatten_jit(x, 1))
    ref = jnp.reshape(x, (2, -1))
    assert out.shape == (2, 4 * 16 * 16), out.shape
    assert out.dtype == x.dtype
    assert bool(jnp.array_equal(out, ref))

    # Ragged / packed-dtype case (tail not a multiple of 128), bf16.
    x2 = jax.random.normal(k2, (2, 3, 5, 7), dtype=jnp.float32).astype(jnp.bfloat16)
    out2 = jax.block_until_ready(flatten_jit(x2, 2))
    ref2 = jnp.reshape(x2, (2, 3, 35))
    assert out2.shape == (2, 3, 35), out2.shape
    assert out2.dtype == x2.dtype
    assert bool(jnp.array_equal(out2, ref2))

    # Multi-block grid with a masked partial last row-block (rows=10, block=8).
    x3 = jax.random.normal(k3, (10, 4, 16, 16), dtype=jnp.float32)
    out3 = jax.block_until_ready(flatten_jit(x3, 1))
    ref3 = jnp.reshape(x3, (10, -1))
    assert out3.shape == (10, 4 * 16 * 16), out3.shape
    assert bool(jnp.array_equal(out3, ref3))

    print("KERNEL_OK")
</pallas_src>

<mosaic_0001>
module attributes {stable_mosaic.version = 11 : i64} {
  func.func @_copy_kernel(%arg0: i32, %arg1: i32, %arg2: memref<2x1024xf32, #tpu.memory_space<vmem>>, %arg3: memref<2x1024xf32, #tpu.memory_space<vmem>>) attributes {dimension_semantics = [#tpu.dimension_semantics<parallel>, #tpu.dimension_semantics<parallel>], iteration_bounds = array<i64: 1, 1>, scalar_prefetch = 0 : i64, scratch_operands = 0 : i64, tpu.core_type = #tpu.core_type<tc>, window_params = [{transform_indices = @transform_0, window_bounds = array<i64: 2, 1024>}, {transform_indices = @transform_1, window_bounds = array<i64: 2, 1024>}]} {
    %c0 = arith.constant 0 : index
    %c0_0 = arith.constant 0 : index
    %0 = vector.load %arg2[%c0, %c0_0] : memref<2x1024xf32, #tpu.memory_space<vmem>>, vector<2x1024xf32>
    %c0_1 = arith.constant 0 : index
    %c0_2 = arith.constant 0 : index
    %1 = vector.load %arg3[%c0_1, %c0_2] : memref<2x1024xf32, #tpu.memory_space<vmem>>, vector<2x1024xf32>
    tpu.vector_store %arg3[%c0_1, %c0_2], %0 {strides = array<i32>} : memref<2x1024xf32, #tpu.memory_space<vmem>>, vector<2x1024xf32>,
    return
  }
  func.func @transform_0(%arg0: i32, %arg1: i32) -> (i32, i32) {
    %c0_i32 = arith.constant 0 : i32
    return %arg0, %arg1 : i32, i32
  }
  func.func @transform_1(%arg0: i32, %arg1: i32) -> (i32, i32) {
    %c0_i32 = arith.constant 0 : i32
    return %arg0, %arg1 : i32, i32
  }
}

</mosaic_0001>

<bundles_post_ra>
// kernel: flatten_pallas.1
= control target key start
LH: loop header
LB: loop body
LE: loop exit
PB: predicated region body
PF: predicated region fallthrough
CT: control target
= control target key end

     0   :  { %s81_s0 = inlined_call_operand.vmem [shape: f32[2,1024], index: 0, kind: input, shape index: {}]   ;;  %s82_s1 = inlined_call_operand.hbm [shape: f32[2,1024], index: 1, kind: output, shape index: {}]  }
   0x1   :  { %v9_v0 = vld [vmem:[%s81_s0] sm:$0xff]  ;;  %v10_v1 = vld [vmem:[%s81_s0 + $0x8] sm:$0xff] }
   0x2   :  { %6 = vsyncpa [#allocation3], 0  ;;  %11 = vst [vmem:[#allocation2] sm:$0xff] %v9_v0  ;;  %s52_s10 = smov [#allocation2]  }
   0x3   :  { %12 = vst [vmem:[#allocation2 + $0x8] sm:$0xff] %v10_v1  ;;  %s19_s11 = sshll.u32 %s52_s10, 4  ;;  %s20_s11 = int_to_ptr.vmem [resolvable:$true] %s19_s11 }
   0x4   :  { %s28_s12 = scalar_lea.vmem %s20_s11, 256  ;;  %p33_p1 = scmp.lt.s32.totalorder %s20_s11, %s20_s11 }
   0x5   :  { %p29_p0 = scmp.ne.s32.totalorder %s20_s11, %s28_s12  ;;  %p34_p2 = scmp.lt.s32.totalorder %s28_s12, %s28_s12 }
   0x7   :  { %p35_p3 = por %p34_p2, %p33_p1 }
   0x9   :  { %p36_p4 = pnand %p35_p3, %p29_p0 }
   0xb   :  { %39 = shalt.err (!%p36_p4)
}
   0xc   :  { %s40_s15 = scalar_lea.hbm %s82_s1, 256 }
   0xd   :  { %p41_p5 = scmp.ne.s32.totalorder %s82_s1, %s40_s15  ;;  %p44_p6 = scmp.lt.u32.totalorder %s40_s15, %s82_s1 }
   0xf   :  { %p46_p7 = pnand %p44_p6, %p41_p5 }
  0x11   :  { %49 = shalt.err (!%p46_p7)
}
  0x12   :  { %22 = dma.vmem_to_hbm [thread:$0]  %s20_s11, 256, %s82_s1, [#allocation3]  }
  0x13   :  { %50 = dma.done.wait [#allocation3], 256  }
  0x14   :  { %51 = vsyncadd [#allocation3], 4294967040 }
  0x15   :  { %26 = vsyncpa [#allocation3], 1 }

</bundles_post_ra>
